<compile_context>
chip_gen: v7x
topology: tpu7x:2x2x1
jax: 0.10.0
libtpu: 0.0.40
codegen_flags: <defaults>
</compile_context>

<pallas_src>
import functools

import jax
import jax.numpy as jnp
from jax.experimental import pallas as pl
from jax.experimental.pallas import tpu as pltpu

_LANE = 128
_BF16_SUBLANE = 16  # bf16 packs 2 rows per 32-bit sublane -> 16-row alignment


def _round_up(x, m):
    return ((x + m - 1) // m) * m


def _cdiv(a, b):
    return -(-a // b)


def _pick_tm(B, cap=512):
    """Batch tile: 16-aligned, <= cap, >=2 tiles for large B (v7x megacore),
    and sized to divide B as evenly as possible (bounds padding waste)."""
    b16 = _round_up(max(B, 1), _BF16_SUBLANE)
    if b16 <= 2 * _BF16_SUBLANE:          # too small to split profitably
        return b16
    n_tiles = max(_cdiv(b16, cap), 2)      # >=2 grid steps -> both TCs on v7x
    return _round_up(_cdiv(b16, n_tiles), _BF16_SUBLANE)


def _mlp_kernel(l_ref, r_ref, w1l_ref, w1r_ref, b1_ref, w2_ref, b2_ref, o_ref):
    # Activations arrive as f32; cast to bf16 here (VPU work hidden under DMA/MXU slack).
    l = l_ref[...].astype(jnp.bfloat16)
    r = r_ref[...].astype(jnp.bfloat16)
    # fc1 on cat([left, right]): concat fused via the pre-split weight halves.
    h = jnp.dot(l, w1l_ref[...], preferred_element_type=jnp.float32)
    h += jnp.dot(r, w1r_ref[...], preferred_element_type=jnp.float32)
    # bias + ReLU in f32 on the accumulator.
    h = jnp.maximum(h + b1_ref[...], 0.0)
    # dropout: eval-mode identity (see TODO at top of file).
    # fc2 (bf16 operands, f32 accumulation), lane-dense padded output, bf16 store.
    out = jnp.dot(h.astype(jnp.bfloat16), w2_ref[...],
                  preferred_element_type=jnp.float32)
    o_ref[...] = (out + b2_ref[...]).astype(o_ref.dtype)


def prepare_params(params, num_classes=8):
    """One-time weight prep (hoisted out of the forward):
    pad hidden/class dims to 128 lanes, split w1 for the fused concat, cast to bf16."""
    w1, b1, w2, b2 = params["w1"], params["b1"], params["w2"], params["b2"]
    in1, hidden_dim = w1.shape
    emb_dim = in1 // 2
    h_pad = _round_up(max(hidden_dim, _LANE), _LANE)
    n_pad = _round_up(max(num_classes, _LANE), _LANE)

    w1_p = jnp.zeros((in1, h_pad), jnp.float32).at[:, :hidden_dim].set(w1)
    b1_p = jnp.zeros((1, h_pad), jnp.float32).at[:, :hidden_dim].set(b1.reshape(1, -1))
    w2_p = jnp.zeros((h_pad, n_pad), jnp.float32).at[:hidden_dim, :num_classes].set(w2)
    b2_p = jnp.zeros((1, n_pad), jnp.float32).at[:, :num_classes].set(b2.reshape(1, -1))

    return {
        "w1_l": w1_p[:emb_dim].astype(jnp.bfloat16),   # (emb_dim, h_pad)
        "w1_r": w1_p[emb_dim:].astype(jnp.bfloat16),   # (emb_dim, h_pad)
        "b1": b1_p,                                     # (1, h_pad) f32
        "w2": w2_p.astype(jnp.bfloat16),                # (h_pad, n_pad)
        "b2": b2_p,                                     # (1, n_pad) f32
    }


@functools.partial(jax.jit, static_argnames=("num_classes",))
def eye_classifier_forward(left, right, prepped, *, num_classes=8):
    """left, right: (B, emb_dim) f32. prepped: output of prepare_params().
    Returns squeezed f32 logits (torch.squeeze semantics)."""
    B, emb_dim = left.shape
    h_pad = prepped["w1_l"].shape[1]
    n_pad = prepped["w2"].shape[1]

    # --- batch tiling (only the batch axis is ever padded/copied in the wrapper) ---
    tm = _pick_tm(B)
    b_pad = _round_up(B, tm)
    if b_pad != B:
        left = jnp.pad(left, ((0, b_pad - B), (0, 0)))
        right = jnp.pad(right, ((0, b_pad - B), (0, 0)))
    grid = (b_pad // tm,)

    # --- VMEM budget guard (v7x has only 64 MiB physical): double-buffered act/out
    #     tiles + resident weights (conservatively counted x2) + kernel temporaries.
    tile_bytes = 2 * (2 * tm * emb_dim * 4 + tm * n_pad * 2)
    weight_bytes = 2 * (2 * emb_dim * h_pad * 2 + h_pad * n_pad * 2
                        + (h_pad + n_pad) * 4)
    scratch_bytes = tm * (2 * emb_dim * 2 + h_pad * 4 + n_pad * 4)
    vmem_limit = min(max(int(1.5 * (tile_bytes + weight_bytes + scratch_bytes)),
                         32 * 1024 * 1024),   # also raises v5e's 16 MiB default
                     64 * 1024 * 1024)

    flops = 2 * b_pad * (2 * emb_dim * h_pad + h_pad * n_pad)
    bytes_accessed = (
        2 * b_pad * emb_dim * 4 +                              # f32 activations in
        (2 * emb_dim * h_pad + h_pad * n_pad) * 2 +            # bf16 weights (resident)
        (h_pad + n_pad) * 4 +                                  # f32 biases
        b_pad * n_pad * 2                                      # bf16 logits out
    )

    logits = pl.pallas_call(
        _mlp_kernel,
        out_shape=jax.ShapeDtypeStruct((b_pad, n_pad), jnp.bfloat16),
        grid_spec=pl.GridSpec(
            grid=grid,
            in_specs=[
                pl.BlockSpec((tm, emb_dim), lambda i: (i, 0)),        # left tile (f32)
                pl.BlockSpec((tm, emb_dim), lambda i: (i, 0)),        # right tile (f32)
                pl.BlockSpec((emb_dim, h_pad), lambda i: (0, 0)),     # w1 left half, resident
                pl.BlockSpec((emb_dim, h_pad), lambda i: (0, 0)),     # w1 right half, resident
                pl.BlockSpec((1, h_pad), lambda i: (0, 0)),           # b1, resident
                pl.BlockSpec((h_pad, n_pad), lambda i: (0, 0)),       # w2, resident
                pl.BlockSpec((1, n_pad), lambda i: (0, 0)),           # b2, resident
            ],
            out_specs=pl.BlockSpec((tm, n_pad), lambda i: (i, 0)),    # lane-dense bf16 logits
        ),
        compiler_params=pltpu.CompilerParams(
            dimension_semantics=("parallel",),   # batch tiles shard across TCs on v7x
            vmem_limit_bytes=vmem_limit,
        ),
        cost_estimate=pl.CostEstimate(
            flops=flops, transcendentals=0, bytes_accessed=bytes_accessed),
    )(left, right, prepped["w1_l"], prepped["w1_r"], prepped["b1"],
      prepped["w2"], prepped["b2"])

    # strip batch + class padding, back to f32, then torch.squeeze semantics.
    return jnp.squeeze(logits[:B, :num_classes].astype(jnp.float32))


def init_params(key, emb_dim, hidden_dim, num_classes=8):
    """Deterministic init mimicking nn.Linear default (U(-1/sqrt(fan_in), +...))."""
    k1, k2, k3, k4 = jax.random.split(key, 4)
    in1 = 2 * emb_dim
    bound1 = 1.0 / jnp.sqrt(in1)
    bound2 = 1.0 / jnp.sqrt(hidden_dim)
    return {
        # stored as (in, out) = transposed relative to torch's (out, in)
        "w1": jax.random.uniform(k1, (in1, hidden_dim), jnp.float32, -bound1, bound1),
        "b1": jax.random.uniform(k2, (hidden_dim,), jnp.float32, -bound1, bound1),
        "w2": jax.random.uniform(k3, (hidden_dim, num_classes), jnp.float32, -bound2, bound2),
        "b2": jax.random.uniform(k4, (num_classes,), jnp.float32, -bound2, bound2),
    }


if __name__ == "__main__":
    B = 8
    emb_dim = 64
    hidden_dim = 32
    num_classes = 8

    key = jax.random.PRNGKey(0)
    k_left, k_right, k_params = jax.random.split(key, 3)
    left = jax.random.normal(k_left, (B, emb_dim), jnp.float32)
    right = jax.random.normal(k_right, (B, emb_dim), jnp.float32)
    params = init_params(k_params, emb_dim, hidden_dim, num_classes)

    # one-time weight prep (padding / split / bf16 cast hoisted out of the forward)
    prepped = prepare_params(params, num_classes=num_classes)
    jax.block_until_ready(prepped)

    logits = eye_classifier_forward(left, right, prepped, num_classes=num_classes)
    jax.block_until_ready(logits)

    # reference: pure-JAX f32 forward (kernel uses bf16 matmul operands + bf16 store)
    x = jnp.concatenate([left, right], axis=-1)
    ref = jnp.maximum(x @ params["w1"] + params["b1"], 0.0) @ params["w2"] + params["b2"]
    ref = jnp.squeeze(ref)

    assert logits.shape == (B, num_classes), logits.shape
    assert jnp.allclose(logits, ref, atol=2e-2, rtol=2e-2), (
        float(jnp.max(jnp.abs(logits - ref))))

    print("KERNEL_OK")
</pallas_src>

<mosaic_0001>
module attributes {stable_mosaic.version = 11 : i64} {
  func.func @_mlp_kernel(%arg0: i32, %arg1: memref<16x64xf32, #tpu.memory_space<vmem>>, %arg2: memref<16x64xf32, #tpu.memory_space<vmem>>, %arg3: memref<64x128xbf16, #tpu.memory_space<vmem>>, %arg4: memref<64x128xbf16, #tpu.memory_space<vmem>>, %arg5: memref<1x128xf32, #tpu.memory_space<vmem>>, %arg6: memref<128x128xbf16, #tpu.memory_space<vmem>>, %arg7: memref<1x128xf32, #tpu.memory_space<vmem>>, %arg8: memref<16x128xbf16, #tpu.memory_space<vmem>>) attributes {dimension_semantics = [#tpu.dimension_semantics<parallel>], iteration_bounds = array<i64: 1>, scalar_prefetch = 0 : i64, scratch_operands = 0 : i64, tpu.core_type = #tpu.core_type<tc>, window_params = [{transform_indices = @transform_0, window_bounds = array<i64: 16, 64>}, {transform_indices = @transform_1, window_bounds = array<i64: 16, 64>}, {pipeline_mode = #tpu.pipeline_mode<synchronous>, transform_indices = @transform_2, window_bounds = array<i64: 64, 128>}, {pipeline_mode = #tpu.pipeline_mode<synchronous>, transform_indices = @transform_3, window_bounds = array<i64: 64, 128>}, {pipeline_mode = #tpu.pipeline_mode<synchronous>, transform_indices = @transform_4, window_bounds = array<i64: 1, 128>}, {pipeline_mode = #tpu.pipeline_mode<synchronous>, transform_indices = @transform_5, window_bounds = array<i64: 128, 128>}, {pipeline_mode = #tpu.pipeline_mode<synchronous>, transform_indices = @transform_6, window_bounds = array<i64: 1, 128>}, {transform_indices = @transform_7, window_bounds = array<i64: 16, 128>}]} {
    %c0 = arith.constant 0 : index
    %c0_0 = arith.constant 0 : index
    %0 = vector.load %arg1[%c0, %c0_0] : memref<16x64xf32, #tpu.memory_space<vmem>>, vector<16x64xf32>
    %1 = arith.truncf %0 : vector<16x64xf32> to vector<16x64xbf16>
    %c0_1 = arith.constant 0 : index
    %c0_2 = arith.constant 0 : index
    %2 = vector.load %arg2[%c0_1, %c0_2] : memref<16x64xf32, #tpu.memory_space<vmem>>, vector<16x64xf32>
    %3 = arith.truncf %2 : vector<16x64xf32> to vector<16x64xbf16>
    %c0_3 = arith.constant 0 : index
    %c0_4 = arith.constant 0 : index
    %4 = vector.load %arg3[%c0_3, %c0_4] : memref<64x128xbf16, #tpu.memory_space<vmem>>, vector<64x128xbf16>
    %cst = arith.constant dense<0.000000e+00> : vector<16x128xf32>
    %5 = tpu.matmul %1, %4, %cst {dimension_numbers = #tpu.dot_dimension_numbers<[1], [0], [0], [1], [0, 0, 1, 1], [], []>} : vector<16x64xbf16>, vector<64x128xbf16>, vector<16x128xf32> -> vector<16x128xf32>
    %c0_5 = arith.constant 0 : index
    %c0_6 = arith.constant 0 : index
    %6 = vector.load %arg4[%c0_5, %c0_6] : memref<64x128xbf16, #tpu.memory_space<vmem>>, vector<64x128xbf16>
    %cst_7 = arith.constant dense<0.000000e+00> : vector<16x128xf32>
    %7 = tpu.matmul %3, %6, %cst_7 {dimension_numbers = #tpu.dot_dimension_numbers<[1], [0], [0], [1], [0, 0, 1, 1], [], []>} : vector<16x64xbf16>, vector<64x128xbf16>, vector<16x128xf32> -> vector<16x128xf32>
    %8 = arith.addf %5, %7 : vector<16x128xf32>
    %c0_8 = arith.constant 0 : index
    %c0_9 = arith.constant 0 : index
    %9 = vector.load %arg5[%c0_8, %c0_9] : memref<1x128xf32, #tpu.memory_space<vmem>>, vector<1x128xf32>
    %10 = vector.broadcast %9 : vector<1x128xf32> to vector<16x128xf32>
    %11 = arith.addf %8, %10 : vector<16x128xf32>
    %cst_10 = arith.constant 0.000000e+00 : f32
    %12 = vector.broadcast %cst_10 : f32 to vector<16x128xf32>
    %13 = arith.maximumf %11, %12 : vector<16x128xf32>
    %14 = arith.truncf %13 : vector<16x128xf32> to vector<16x128xbf16>
    %c0_11 = arith.constant 0 : index
    %c0_12 = arith.constant 0 : index
    %15 = vector.load %arg6[%c0_11, %c0_12] : memref<128x128xbf16, #tpu.memory_space<vmem>>, vector<128x128xbf16>
    %cst_13 = arith.constant dense<0.000000e+00> : vector<16x128xf32>
    %16 = tpu.matmul %14, %15, %cst_13 {dimension_numbers = #tpu.dot_dimension_numbers<[1], [0], [0], [1], [0, 0, 1, 1], [], []>} : vector<16x128xbf16>, vector<128x128xbf16>, vector<16x128xf32> -> vector<16x128xf32>
    %c0_14 = arith.constant 0 : index
    %c0_15 = arith.constant 0 : index
    %17 = vector.load %arg7[%c0_14, %c0_15] : memref<1x128xf32, #tpu.memory_space<vmem>>, vector<1x128xf32>
    %18 = vector.broadcast %17 : vector<1x128xf32> to vector<16x128xf32>
    %19 = arith.addf %16, %18 : vector<16x128xf32>
    %20 = arith.truncf %19 : vector<16x128xf32> to vector<16x128xbf16>
    %c0_16 = arith.constant 0 : index
    %c0_17 = arith.constant 0 : index
    %21 = vector.load %arg8[%c0_16, %c0_17] : memref<16x128xbf16, #tpu.memory_space<vmem>>, vector<16x128xbf16>
    tpu.vector_store %arg8[%c0_16, %c0_17], %20 {strides = array<i32>} : memref<16x128xbf16, #tpu.memory_space<vmem>>, vector<16x128xbf16>,
    return
  }
  func.func @transform_0(%arg0: i32) -> (i32, i32) {
    %c0_i32 = arith.constant 0 : i32
    %c0_i32_0 = arith.constant 0 : i32
    return %arg0, %c0_i32 : i32, i32
  }
  func.func @transform_1(%arg0: i32) -> (i32, i32) {
    %c0_i32 = arith.constant 0 : i32
    %c0_i32_0 = arith.constant 0 : i32
    return %arg0, %c0_i32 : i32, i32
  }
  func.func @transform_2(%arg0: i32) -> (i32, i32) {
    %c0_i32 = arith.constant 0 : i32
    %c0_i32_0 = arith.constant 0 : i32
    %c0_i32_1 = arith.constant 0 : i32
    return %c0_i32, %c0_i32_0 : i32, i32
  }
  func.func @transform_3(%arg0: i32) -> (i32, i32) {
    %c0_i32 = arith.constant 0 : i32
    %c0_i32_0 = arith.constant 0 : i32
    %c0_i32_1 = arith.constant 0 : i32
    return %c0_i32, %c0_i32_0 : i32, i32
  }
  func.func @transform_4(%arg0: i32) -> (i32, i32) {
    %c0_i32 = arith.constant 0 : i32
    %c0_i32_0 = arith.constant 0 : i32
    %c0_i32_1 = arith.constant 0 : i32
    return %c0_i32, %c0_i32_0 : i32, i32
  }
  func.func @transform_5(%arg0: i32) -> (i32, i32) {
    %c0_i32 = arith.constant 0 : i32
    %c0_i32_0 = arith.constant 0 : i32
    %c0_i32_1 = arith.constant 0 : i32
    return %c0_i32, %c0_i32_0 : i32, i32
  }
  func.func @transform_6(%arg0: i32) -> (i32, i32) {
    %c0_i32 = arith.constant 0 : i32
    %c0_i32_0 = arith.constant 0 : i32
    %c0_i32_1 = arith.constant 0 : i32
    return %c0_i32, %c0_i32_0 : i32, i32
  }
  func.func @transform_7(%arg0: i32) -> (i32, i32) {
    %c0_i32 = arith.constant 0 : i32
    %c0_i32_0 = arith.constant 0 : i32
    return %arg0, %c0_i32 : i32, i32
  }
}

</mosaic_0001>

<bundles_post_ra>
// kernel: eye_classifier_forward.1
= control target key start
LH: loop header
LB: loop body
LE: loop exit
PB: predicated region body
PF: predicated region fallthrough
CT: control target
= control target key end

     0   :  { %12 = vsyncpa [#allocation3], 0  ;;  %s636_s0 = inlined_call_operand.vmem [shape: f32[16,64], index: 0, kind: input, shape index: {}]   ;;  %s637_s1 = inlined_call_operand.vmem [shape: f32[16,64], index: 1, kind: input, shape index: {}]   ;;  %s638_s2 = inlined_call_operand.hbm [shape: bf16[64,128], index: 2, kind: input, shape index: {}]   ;;  %s639_s3 = inlined_call_operand.hbm [shape: bf16[64,128], index: 3, kind: input, shape index: {}]   ;;  %s640_s4 = inlined_call_operand.vmem [shape: f32[1,128], index: 4, kind: input, shape index: {}]   ;;  %s641_s5 = inlined_call_operand.vmem [shape: bf16[128,128], index: 5, kind: input, shape index: {}]   ;;  %s642_s6 = inlined_call_operand.vmem [shape: f32[1,128], index: 6, kind: input, shape index: {}]   ;;  %s643_s7 = inlined_call_operand.vmem [shape: bf16[16,128], index: 7, kind: output, shape index: {}]  }
   0x1   :  { %13 = vsyncpa [#allocation5], 0  ;;  %s516_s24 = smov [#allocation2]   ;;  %s468_s28 = scalar_lea.hbm %s638_s2, 512 }
   0x2   :  { %s23_s25 = sshll.u32 %s516_s24, 4  ;;  %p469_p0 = scmp.ne.s32.totalorder %s638_s2, %s468_s28  ;;  %s24_s25 = int_to_ptr.vmem [resolvable:$true] %s23_s25 }
   0x3   :  { %p472_p1 = scmp.lt.u32.totalorder %s468_s28, %s638_s2 }
   0x5   :  { %p474_p2 = pnand %p472_p1, %p469_p0 }
   0x7   :  { %477 = shalt.err (!%p474_p2)
}
   0x8   :  { %s478_s10 = scalar_lea.vmem %s24_s25, 512  ;;  %p483_p4 = scmp.lt.s32.totalorder %s24_s25, %s24_s25 }
   0x9   :  { %p479_p3 = scmp.ne.s32.totalorder %s24_s25, %s478_s10  ;;  %p484_p5 = scmp.lt.s32.totalorder %s478_s10, %s478_s10 }
   0xb   :  { %p485_p6 = por %p484_p5, %p483_p4 }
   0xd   :  { %p486_p7 = pnand %p485_p6, %p479_p3 }
   0xf   :  { %489 = shalt.err (!%p486_p7)
}
  0x10   :  { %s517_s11 = smov 64   ;;  %s518_s12 = smov 4  }
  0x11   :  { %29 = dma.hbm_to_vmem [thread:$0]  %s638_s2, 512, %s24_s25, [#allocation3], %s517_s11, %s517_s11, %s518_s12  }
  0x12   :  { %s519_s15 = smov [#allocation4]   ;;  %s490_s19 = scalar_lea.hbm %s639_s3, 512 }
  0x13   :  { %s35_s16 = sshll.u32 %s519_s15, 4  ;;  %p491_p8 = scmp.ne.s32.totalorder %s639_s3, %s490_s19  ;;  %s36_s16 = int_to_ptr.vmem [resolvable:$true] %s35_s16 }
  0x14   :  { %p494_p9 = scmp.lt.u32.totalorder %s490_s19, %s639_s3 }
  0x16   :  { %p496_p10 = pnand %p494_p9, %p491_p8 }
  0x18   :  { %499 = shalt.err (!%p496_p10)
}
  0x19   :  { %s500_s24 = scalar_lea.vmem %s36_s16, 512  ;;  %p505_p12 = scmp.lt.s32.totalorder %s36_s16, %s36_s16 }
  0x1a   :  { %p501_p11 = scmp.ne.s32.totalorder %s36_s16, %s500_s24  ;;  %p506_p13 = scmp.lt.s32.totalorder %s500_s24, %s500_s24 }
  0x1c   :  { %p507_p0 = por %p506_p13, %p505_p12 }
  0x1e   :  { %p508_p1 = pnand %p507_p0, %p501_p11 }
  0x20   :  { %511 = shalt.err (!%p508_p1)
}
  0x21   :  { %41 = dma.hbm_to_vmem [thread:$0]  %s639_s3, 512, %s36_s16, [#allocation5], %s517_s11, %s517_s11, %s518_s12  }
  0x22   :  { %512 = dma.done.wait [#allocation3], 512  }
  0x23   :  { %513 = vsyncadd [#allocation3], 4294966784 }
  0x24   :  { %514 = dma.done.wait [#allocation5], 512  }
  0x25   :  { %515 = vsyncadd [#allocation5], 4294966784  ;;  %v520_v0 = vmov 0.0   ;;  %vm521_vm0 = vmmov 0   ;;  %v452_v1 = vld [vmem:[#allocation4] sm:$0xff]   ;;  %v453_v2 = vld [vmem:[#allocation4 + $0x8] sm:$0xff]  }
  0x26   :  { %402 = vmatprep.subr.bf16.mxu1 %v520_v0  ;;  %410 = vmatprep.mubr.msk.bf16.mxu1 %vm521_vm0, %v520_v0  ;;  %v454_v3 = vld [vmem:[#allocation4 + $0x10] sm:$0xff]   ;;  %v455_v4 = vld [vmem:[#allocation4 + $0x18] sm:$0xff]   ;;  %v58_v5 = vld [vmem:[%s637_s1] sm:$0xff]  ;;  %vm101_vm1 = vcmask 523264  }
  0x27   :  { %426 = vmatprep.subr.bf16.mxu0 %v520_v0  ;;  %442 = vmatprep.mubr.msk.bf16.mxu0 %vm521_vm0, %v520_v0  ;;  %v59_v6 = vld [vmem:[%s637_s1 + $0x8] sm:$0xff]  ;;  %v460_v7 = vld [vmem:[%s641_s5] sm:$0xff]   ;;  %v458_v11 = vld [vmem:[#allocation2 + $0x10] sm:$0xff]  }
  0x28   :  { %403 = vmatpush3.bf16.msra.mxu1 %v452_v1  ;;  %v456_v8 = vld [vmem:[#allocation2] sm:$0xff]   ;;  %427 = vmatpush3.bf16.msra.mxu0 %v460_v7  ;;  %v60_v9 = vpack.c.bf16 %v59_v6, %v58_v5  ;;  %v457_v10 = vld [vmem:[#allocation2 + $0x8] sm:$0xff]   ;;  %v459_v12 = vld [vmem:[#allocation2 + $0x18] sm:$0xff]  }
  0x29   :  { %404 = vmatprep.subr.bf16.mxu1 %v520_v0  ;;  %428 = vmatprep.subr.bf16.mxu0 %v520_v0  ;;  %v55_v13 = vld [vmem:[%s636_s0] sm:$0xff]  ;;  %v56_v14 = vld [vmem:[%s636_s0 + $0x8] sm:$0xff]  ;;  %v462_v17 = vld [vmem:[%s641_s5 + $0x10] sm:$0xff]  }
  0x2a   :  { %v57_v15 = vpack.c.bf16 %v56_v14, %v55_v13  ;;  %v461_v16 = vld [vmem:[%s641_s5 + $0x8] sm:$0xff]   ;;  %v463_v18 = vld [vmem:[%s641_s5 + $0x18] sm:$0xff]   ;;  %v464_v19 = vld [vmem:[%s641_s5 + $0x20] sm:$0xff]  }
  0x2b   :  { %v465_v20 = vld [vmem:[%s641_s5 + $0x28] sm:$0xff]   ;;  %v466_v21 = vld [vmem:[%s641_s5 + $0x30] sm:$0xff]   ;;  %v467_v22 = vld [vmem:[%s641_s5 + $0x38] sm:$0xff]  }
  0x2c   :  { %405 = vmatpush3.bf16.msra.mxu1 %v453_v2  ;;  %429 = vmatpush3.bf16.msra.mxu0 %v461_v16  ;;  %v364_v28 = vld [vmem:[%s640_s4] ss:$0 sm:$0xff] }
  0x2d   :  { %406 = vmatprep.subr.bf16.mxu1 %v520_v0  ;;  %430 = vmatprep.subr.bf16.mxu0 %v520_v0  ;;  %v365_v39 = vld [vmem:[%s642_s6] ss:$0 sm:$0xff] }
  0x30   :  { %407 = vmatpush3.bf16.msra.mxu1 %v454_v3  ;;  %431 = vmatpush3.bf16.msra.mxu0 %v462_v17 }
  0x31   :  { %408 = vmatprep.subr.bf16.mxu1 %v520_v0  ;;  %432 = vmatprep.subr.bf16.mxu0 %v520_v0 }
  0x34   :  { %409 = vmatpush3.bf16.msra.mxu1 %v455_v4  ;;  %433 = vmatpush3.bf16.msra.mxu0 %v463_v18 }
  0x35   :  { %414 = vmatprep.subr.bf16.mxu1 %v520_v0  ;;  %434 = vmatprep.subr.bf16.mxu0 %v520_v0 }
  0x37   :  { %411 = vmatmul.mubr.msk.bf16.vlgmr.msra.gmra.mrb[0].mxu1 %vm101_vm1, %v60_v9 }
  0x38   :  { %415 = vmatpush3.bf16.msra.mxu1 %v456_v8  ;;  %422 = vmatprep.mubr.msk.bf16.mxu1 %vm521_vm0, %v520_v0 }
  0x39   :  { %416 = vmatprep.subr.bf16.mxu1 %v520_v0  ;;  %435 = vmatpush3.bf16.msra.mxu0 %v464_v19 }
  0x3a   :  { %436 = vmatprep.subr.bf16.mxu0 %v520_v0 }
  0x3c   :  { %417 = vmatpush3.bf16.msra.mxu1 %v457_v10 }
  0x3d   :  { %418 = vmatprep.subr.bf16.mxu1 %v520_v0  ;;  %437 = vmatpush3.bf16.msra.mxu0 %v465_v20 }
  0x3e   :  { %438 = vmatprep.subr.bf16.mxu0 %v520_v0 }
  0x40   :  { %419 = vmatpush3.bf16.msra.mxu1 %v458_v11 }
  0x41   :  { %420 = vmatprep.subr.bf16.mxu1 %v520_v0  ;;  %439 = vmatpush3.bf16.msra.mxu0 %v466_v21 }
  0x42   :  { %440 = vmatprep.subr.bf16.mxu0 %v520_v0 }
  0x44   :  { %421 = vmatpush3.bf16.msra.mxu1 %v459_v12 }
  0x45   :  { %441 = vmatpush3.bf16.msra.mxu0 %v467_v22 }
  0x47   :  { %423 = vmatmul.mubr.msk.bf16.vlgmr.msra.gmra.mrb[4].mxu1 %vm101_vm1, %v57_v15 }
 0x10a   :  { %v139_v23 = vpop.f32.mrb[0].mxu1 }
 0x10b   :  { %v412_v24 = vpop.f32.mrb[1].mxu1 }
 0x10c   :  { %v142_v25 = vpop.f32.mrb[2].mxu1 }
 0x10d   :  { %v413_v26 = vpop.f32.mrb[3].mxu1 }
 0x11a   :  { %v207_v27 = vpop.f32.mrb[4].mxu1 }
 0x11b   :  { %v208_v29 = vadd.f32 %v207_v27, %v139_v23  ;;  %v424_v30 = vpop.f32.mrb[5].mxu1 }
 0x11c   :  { %v210_v31 = vpop.f32.mrb[6].mxu1 }
 0x11d   :  { %v221_v32 = vadd.f32 %v364_v28, %v208_v29  ;;  %v211_v33 = vadd.f32 %v210_v31, %v142_v25  ;;  %v425_v34 = vpop.f32.mrb[7].mxu1 }
 0x11f   :  { %v222_v35 = vadd.f32 %v364_v28, %v211_v33  ;;  %v223_v36 = vmax.f32 %v221_v32, 0.0 }
 0x121   :  { %v224_v37 = vmax.f32 %v222_v35, 0.0 }
 0x123   :  { %v225_v38 = vpack.c.bf16 %v224_v37, %v223_v36 }
 0x125   :  { %443 = vmatmul.mubr.bf16.vlgmr.msra.gmra.mrb[0].mxu0 %v225_v38 }
 0x1f8   :  { %v331_v40 = vpop.f32.mrb[0].mxu0 }
 0x1f9   :  { %v444_v41 = vpop.f32.mrb[1].mxu0  ;;  %v332_v43 = vadd.f32 %v365_v39, %v331_v40 }
 0x1fa   :  { %v334_v42 = vpop.f32.mrb[2].mxu0 }
 0x1fb   :  { %v335_v44 = vadd.f32 %v365_v39, %v334_v42  ;;  %v445_v45 = vpop.f32.mrb[3].mxu0 }
 0x1fd   :  { %v381_v46 = vpack.c.bf16 %v335_v44, %v332_v43 }
 0x1ff   :  { %382 = vst [vmem:[%s643_s7] sm:$0xff] %v381_v46  }
 0x200   :  { %352 = vsyncpa [#allocation3], 1 }
 0x201   :  { %353 = vsyncpa [#allocation5], 1 }

</bundles_post_ra>
